<compile_context>
chip_gen: v6e
topology: v6e:2x2x1
jax: 0.10.0
libtpu: 0.0.40
codegen_flags: <defaults>
</compile_context>

<pallas_src>
from functools import partial

import jax
import jax.numpy as jnp
from jax.experimental import pallas as pl
from jax.experimental.pallas import tpu as pltpu


def _round_up(x, m):
    return ((x + m - 1) // m) * m


def _patch_embed_kernel(x_ref, wT_ref, b_ref, o_ref):
    # x_ref : (TM, K)   wT_ref : (K, dm)   b_ref : (1, dm)   o_ref : (TM, dm)
    acc = jnp.dot(x_ref[...], wT_ref[...], preferred_element_type=jnp.float32)
    o_ref[...] = (acc + b_ref[...]).astype(o_ref.dtype)


def prepare_params(weight, bias):
    """One-time parameter prep (NOT in the hot path).

    weight: (dm, K) as in nn.Linear; bias: (dm,)
    Returns wT: (K, dm), b: (1, dm).  dm=64 is kept as-is: it equals the full
    last dim, so the kernel's output block is legal without lane padding and
    we write exactly the bytes the consumer needs.
    """
    dm, K = weight.shape
    wT = weight.T                       # transpose once at init
    b = bias.reshape(1, dm)
    return wT, b


@partial(jax.jit, static_argnames=("tm",))
def patch_embed_batched(patches, wT, b, *, tm=512):
    """patches: (N, patch_size, embedding_dim)  ->  tokens: (N, dm).

    Each row is flattened (patch.view(-1)) and mapped through the same Linear,
    i.e. N independent applications of the PyTorch module's forward.
    """
    N = patches.shape[0]
    K, dm = wT.shape

    # Flatten trailing dims (contiguous, no relayout) -> (N, K) activations.
    x = patches.reshape(N, K).astype(wT.dtype)

    # Tiny-N path: a few-microsecond mat-vec; pallas_call dispatch + DMA setup
    # would dominate, so just let XLA do it.
    if N < 128:
        return (x @ wT + b[0]).astype(patches.dtype)

    # Row-tile sizing: large tiles for HBM-roofline streaming, but clamp so
    # the grid keeps >=2 steps (v7x megacore sharding of the parallel axis).
    tm_eff = min(tm, _round_up(pl.cdiv(N, 2), 8))
    grid = (pl.cdiv(N, tm_eff),)        # partial final block handled by Pallas

    bytes_accessed = (N * K + K * dm + dm + N * dm) * jnp.dtype(wT.dtype).itemsize
    cost = pl.CostEstimate(flops=2 * N * K * dm,
                           transcendentals=0,
                           bytes_accessed=int(bytes_accessed))

    out = pl.pallas_call(
        _patch_embed_kernel,
        out_shape=jax.ShapeDtypeStruct((N, dm), patches.dtype),
        grid_spec=pltpu.PrefetchScalarGridSpec(
            num_scalar_prefetch=0,
            grid=grid,
            in_specs=[
                # Activations stream: one (tm_eff, K) tile per grid step.
                pl.BlockSpec((tm_eff, K), lambda i: (i, 0)),
                # Weight resident in VMEM across the whole grid.
                pl.BlockSpec((K, dm), lambda i: (0, 0)),
                # Bias resident in VMEM across the whole grid.
                pl.BlockSpec((1, dm), lambda i: (0, 0)),
            ],
            out_specs=pl.BlockSpec((tm_eff, dm), lambda i: (i, 0)),
        ),
        compiler_params=pltpu.CompilerParams(
            # M axis is embarrassingly parallel -> v7x megacore sharding.
            dimension_semantics=("parallel",),
        ),
        cost_estimate=cost,
    )(x, wT, b)

    return out


def patch_embed(patch, wT, b):
    """Exact PyTorch-module semantics: one (patch_size, embedding_dim) patch
    -> (dm,) token.  N=1 takes the plain-XLA fallback inside the batched
    wrapper (no wasted kernel dispatch)."""
    return patch_embed_batched(patch[None], wT, b)[0]


if __name__ == "__main__":
    # Module hyperparameters (small, consistent with the forward pass).
    patch_size = 8
    embedding_dim = 32
    dm = 64
    input_dim = patch_size * embedding_dim      # K = 256
    n_patches = 300                             # non-multiple of the tile -> partial block

    key = jax.random.PRNGKey(0)
    k_patch, k_w, k_b = jax.random.split(key, 3)

    # Deterministic synthetic inputs / nn.Linear(input_dim, dm)-shaped params.
    patches = jax.random.normal(
        k_patch, (n_patches, patch_size, embedding_dim), dtype=jnp.float32)
    weight = jax.random.normal(k_w, (dm, input_dim), dtype=jnp.float32) * 0.02
    bias = jax.random.normal(k_b, (dm,), dtype=jnp.float32) * 0.02

    # One-time param prep (transpose + reshape) -- outside the hot path.
    wT, b = prepare_params(weight, bias)

    # Batched path: 300 patches -> tm_eff=152, grid=(2,), partial last block.
    tokens = patch_embed_batched(patches, wT, b)
    tokens = jax.block_until_ready(tokens)

    ref = patches.reshape(n_patches, input_dim) @ weight.T + bias
    assert tokens.shape == (n_patches, dm)
    assert jnp.allclose(tokens, ref, atol=2e-5, rtol=1e-5)

    # Single-patch path: exact module semantics patch -> (dm,) token.
    token0 = patch_embed(patches[0], wT, b)
    token0 = jax.block_until_ready(token0)
    assert token0.shape == (dm,)
    assert jnp.allclose(token0, ref[0], atol=2e-5, rtol=1e-5)

    print("KERNEL_OK")
</pallas_src>

<mosaic_0001>
module attributes {stable_mosaic.version = 11 : i64} {
  func.func @_patch_embed_kernel(%arg0: i32, %arg1: memref<152x256xf32, #tpu.memory_space<vmem>>, %arg2: memref<256x64xf32, #tpu.memory_space<vmem>>, %arg3: memref<1x64xf32, #tpu.memory_space<vmem>>, %arg4: memref<152x64xf32, #tpu.memory_space<vmem>>) attributes {dimension_semantics = [#tpu.dimension_semantics<parallel>], iteration_bounds = array<i64: 2>, scalar_prefetch = 0 : i64, scratch_operands = 0 : i64, tpu.core_type = #tpu.core_type<tc>, window_params = [{transform_indices = @transform_0, window_bounds = array<i64: 152, 256>}, {pipeline_mode = #tpu.pipeline_mode<synchronous>, transform_indices = @transform_1, window_bounds = array<i64: 256, 64>}, {pipeline_mode = #tpu.pipeline_mode<synchronous>, transform_indices = @transform_2, window_bounds = array<i64: 1, 64>}, {transform_indices = @transform_3, window_bounds = array<i64: 152, 64>}]} {
    %c0 = arith.constant 0 : index
    %c0_0 = arith.constant 0 : index
    %0 = vector.load %arg1[%c0, %c0_0] : memref<152x256xf32, #tpu.memory_space<vmem>>, vector<152x256xf32>
    %c0_1 = arith.constant 0 : index
    %c0_2 = arith.constant 0 : index
    %1 = vector.load %arg2[%c0_1, %c0_2] : memref<256x64xf32, #tpu.memory_space<vmem>>, vector<256x64xf32>
    %cst = arith.constant dense<0.000000e+00> : vector<152x64xf32>
    %2 = tpu.matmul %0, %1, %cst {dimension_numbers = #tpu.dot_dimension_numbers<[1], [0], [0], [1], [0, 0, 1, 1], [], []>} : vector<152x256xf32>, vector<256x64xf32>, vector<152x64xf32> -> vector<152x64xf32>
    %c0_3 = arith.constant 0 : index
    %c0_4 = arith.constant 0 : index
    %3 = vector.load %arg3[%c0_3, %c0_4] : memref<1x64xf32, #tpu.memory_space<vmem>>, vector<1x64xf32>
    %4 = vector.broadcast %3 : vector<1x64xf32> to vector<152x64xf32>
    %5 = arith.addf %2, %4 : vector<152x64xf32>
    %c0_5 = arith.constant 0 : index
    %c0_6 = arith.constant 0 : index
    %6 = vector.load %arg4[%c0_5, %c0_6] : memref<152x64xf32, #tpu.memory_space<vmem>>, vector<152x64xf32>
    tpu.vector_store %arg4[%c0_5, %c0_6], %5 {strides = array<i32>} : memref<152x64xf32, #tpu.memory_space<vmem>>, vector<152x64xf32>,
    return
  }
  func.func @transform_0(%arg0: i32) -> (i32, i32) {
    %c0_i32 = arith.constant 0 : i32
    %c0_i32_0 = arith.constant 0 : i32
    return %arg0, %c0_i32 : i32, i32
  }
  func.func @transform_1(%arg0: i32) -> (i32, i32) {
    %c0_i32 = arith.constant 0 : i32
    %c0_i32_0 = arith.constant 0 : i32
    %c0_i32_1 = arith.constant 0 : i32
    return %c0_i32, %c0_i32_0 : i32, i32
  }
  func.func @transform_2(%arg0: i32) -> (i32, i32) {
    %c0_i32 = arith.constant 0 : i32
    %c0_i32_0 = arith.constant 0 : i32
    %c0_i32_1 = arith.constant 0 : i32
    return %c0_i32, %c0_i32_0 : i32, i32
  }
  func.func @transform_3(%arg0: i32) -> (i32, i32) {
    %c0_i32 = arith.constant 0 : i32
    %c0_i32_0 = arith.constant 0 : i32
    return %arg0, %c0_i32 : i32, i32
  }
}

</mosaic_0001>

<bundles_post_ra>
// kernel: patch_embed_batched.1
= control target key start
LH: loop header
LB: loop body
LE: loop exit
PB: predicated region body
PF: predicated region fallthrough
CT: control target
= control target key end

     0   :  { %s604_s12 = smov 0   ;;  %s891_s0 = inlined_call_operand.vmem [shape: f32[300,256], index: 0, kind: input, shape index: {}]   ;;  %s892_s1 = inlined_call_operand.vmem [shape: f32[256,64], index: 1, kind: input, shape index: {}]   ;;  %s893_s2 = inlined_call_operand.vmem [shape: f32[1,64], index: 2, kind: input, shape index: {}]   ;;  %s894_s3 = inlined_call_operand.vmem [shape: f32[300,64], index: 3, kind: output, shape index: {}]  }
   0x1 LB: > { %s490_s13 = sadd.s32 4294967295, %s581_s12   ;;  %p494_p0 = scmp.ge.s32.totalorder %s581_s12, 1  ;;  %s581_s12 = sphi %s604_s12, %s13_s12  }
   0x2   : > { %p139_p1 = scmp.lt.s32.totalorder %s581_s12, 3 }
   0x4   : > { %p140_p2 = pnand %p494_p0, %p139_p1 }
   0x5   : > { %s164_s6 = smul.u32 (!%p140_p2), 19, %s490_s13 }
   0x6   : > { %143 = sbr.rel (%p140_p2) target bundleno = 308 (0x134), region = 32 }
   0x7   : > { %p165_p3 = scmp.lt.s32.totalorder (!%p140_p2), %s164_s6, 37 }
   0xb   : > { %v230_v0 = vld [vmem:[%s892_s1 + $0x78] sm:$0xff]  ;;  %v583_v1 = vmov 0.0   ;;  %v229_v2 = vld [vmem:[%s892_s1 + $0x70] sm:$0xff]  ;;  %v228_v3 = vld [vmem:[%s892_s1 + $0x68] sm:$0xff]  ;;  %s896_s6 = smov (!%p165_p3, %s164_s6), 37  ;;  %vm414_vm0 = vcmask 523264  }
   0xc   : > { %254 = vmatprep.subr.mxu0 %v583_v1  ;;  %502 = vmatprep.subr.mxu1 %v583_v1  ;;  %v227_v4 = vld [vmem:[%s892_s1 + $0x60] sm:$0xff]  ;;  %v226_v5 = vld [vmem:[%s892_s1 + $0x58] sm:$0xff]  ;;  %v225_v6 = vld [vmem:[%s892_s1 + $0x50] sm:$0xff]  ;;  %s501_s20 = sshll.u32 %s896_s6, 4  ;;  %s497_s5 = sshll.u32 %s896_s6, 3 }
   0xd   : > { %255 = vmatpush1.msra.mxu0 %v230_v0  ;;  %534 = vmatpush1.msra.mxu1 %v230_v0  ;;  %v224_v7 = vld [vmem:[%s892_s1 + $0x48] sm:$0xff]  ;;  %v223_v8 = vld [vmem:[%s892_s1 + $0x40] sm:$0xff]  ;;  %v222_v9 = vld [vmem:[%s892_s1 + $0x38] sm:$0xff]  ;;  %s768_s27 = scalar_lea.vmem %s891_s0, %s501_s20  ;;  %s829_s13 = scalar_lea.vmem %s894_s3, %s497_s5 }
   0xe   : > { %256 = vmatprep.subr.mxu0 %v583_v1  ;;  %503 = vmatprep.subr.mxu1 %v583_v1  ;;  %v221_v10 = vld [vmem:[%s892_s1 + $0x30] sm:$0xff]  ;;  %v220_v11 = vld [vmem:[%s892_s1 + $0x28] sm:$0xff]  ;;  %v219_v12 = vld [vmem:[%s892_s1 + $0x20] sm:$0xff] }
   0xf   : > { %257 = vmatpush1.msra.mxu0 %v229_v2  ;;  %535 = vmatpush1.msra.mxu1 %v229_v2  ;;  %v218_v13 = vld [vmem:[%s892_s1 + $0x18] sm:$0xff]  ;;  %v217_v14 = vld [vmem:[%s892_s1 + $0x10] sm:$0xff]  ;;  %v216_v15 = vld [vmem:[%s892_s1 + $0x8] sm:$0xff] }
  0x10   : > { %258 = vmatprep.subr.mxu0 %v583_v1  ;;  %504 = vmatprep.subr.mxu1 %v583_v1  ;;  %v215_v16 = vld [vmem:[%s892_s1] sm:$0xff]  ;;  %v246_v17 = vld [vmem:[%s892_s1 + $0xf8] sm:$0xff]  ;;  %v245_v18 = vld [vmem:[%s892_s1 + $0xf0] sm:$0xff] }
  0x11   : > { %259 = vmatpush1.msra.mxu0 %v228_v3  ;;  %536 = vmatpush1.msra.mxu1 %v228_v3  ;;  %v244_v19 = vld [vmem:[%s892_s1 + $0xe8] sm:$0xff]  ;;  %v243_v20 = vld [vmem:[%s892_s1 + $0xe0] sm:$0xff]  ;;  %v242_v21 = vld [vmem:[%s892_s1 + $0xd8] sm:$0xff] }
  0x12   : > { %260 = vmatprep.subr.mxu0 %v583_v1  ;;  %505 = vmatprep.subr.mxu1 %v583_v1  ;;  %v241_v22 = vld [vmem:[%s892_s1 + $0xd0] sm:$0xff]  ;;  %v240_v23 = vld [vmem:[%s892_s1 + $0xc8] sm:$0xff]  ;;  %v239_v24 = vld [vmem:[%s892_s1 + $0xc0] sm:$0xff] }
  0x13   : > { %261 = vmatpush1.msra.mxu0 %v227_v4  ;;  %537 = vmatpush1.msra.mxu1 %v227_v4  ;;  %v238_v25 = vld [vmem:[%s892_s1 + $0xb8] sm:$0xff]  ;;  %v237_v26 = vld [vmem:[%s892_s1 + $0xb0] sm:$0xff]  ;;  %v236_v27 = vld [vmem:[%s892_s1 + $0xa8] sm:$0xff] }
  0x14   : > { %262 = vmatprep.subr.mxu0 %v583_v1  ;;  %506 = vmatprep.subr.mxu1 %v583_v1  ;;  %v235_v28 = vld [vmem:[%s892_s1 + $0xa0] sm:$0xff]  ;;  %v234_v29 = vld [vmem:[%s892_s1 + $0x98] sm:$0xff]  ;;  %v233_v30 = vld [vmem:[%s892_s1 + $0x90] sm:$0xff] }
  0x15   : > { %263 = vmatpush1.msra.mxu0 %v226_v5  ;;  %538 = vmatpush1.msra.mxu1 %v226_v5  ;;  %v232_v31 = vld [vmem:[%s892_s1 + $0x88] sm:$0xff]  ;;  %v231_v33 = vld [vmem:[%s892_s1 + $0x80] sm:$0xff]  ;;  %v180_v36 = vld [vmem:[%s768_s27 + $0x18] sm:$0xff] }
  0x16   : > { %264 = vmatprep.subr.mxu0 %v583_v1  ;;  %507 = vmatprep.subr.mxu1 %v583_v1  ;;  %v178_v32 = vld [vmem:[%s768_s27 + $0x8] sm:$0xff]  ;;  %v177_v34 = vld [vmem:[%s768_s27] sm:$0xff]  ;;  %v200_v38 = vld [vmem:[%s768_s27 + $0xb8] sm:$0xff] }
  0x17   : > { %265 = vmatpush1.msra.mxu0 %v225_v6  ;;  %539 = vmatpush1.msra.mxu1 %v225_v6  ;;  %v198_v35 = vld [vmem:[%s768_s27 + $0xa8] sm:$0xff]  ;;  %v197_v37 = vld [vmem:[%s768_s27 + $0xa0] sm:$0xff]  ;;  %v179_v39 = vld [vmem:[%s768_s27 + $0x10] sm:$0xff] }
  0x18   : > { %266 = vmatprep.subr.mxu0 %v583_v1  ;;  %508 = vmatprep.subr.mxu1 %v583_v1  ;;  %v182_v40 = vld [vmem:[%s768_s27 + $0x28] sm:$0xff]  ;;  %v199_v41 = vld [vmem:[%s768_s27 + $0xb0] sm:$0xff]  ;;  %v181_v43 = vld [vmem:[%s768_s27 + $0x20] sm:$0xff] }
  0x19   : > { %267 = vmatpush1.msra.mxu0 %v224_v7  ;;  %540 = vmatpush1.msra.mxu1 %v224_v7  ;;  %v202_v42 = vld [vmem:[%s768_s27 + $0xc8] sm:$0xff]  ;;  %v184_v44 = vld [vmem:[%s768_s27 + $0x38] sm:$0xff]  ;;  %v201_v45 = vld [vmem:[%s768_s27 + $0xc0] sm:$0xff] }
  0x1a   : > { %268 = vmatprep.subr.mxu0 %v583_v1  ;;  %509 = vmatprep.subr.mxu1 %v583_v1  ;;  %v204_v46 = vld [vmem:[%s768_s27 + $0xd8] sm:$0xff]  ;;  %v183_v47 = vld [vmem:[%s768_s27 + $0x30] sm:$0xff]  ;;  %v186_v48 = vld [vmem:[%s768_s27 + $0x48] sm:$0xff] }
  0x1b   : > { %269 = vmatpush1.msra.mxu0 %v223_v8  ;;  %541 = vmatpush1.msra.mxu1 %v223_v8  ;;  %v203_v49 = vld [vmem:[%s768_s27 + $0xd0] sm:$0xff]  ;;  %v206_v50 = vld [vmem:[%s768_s27 + $0xe8] sm:$0xff]  ;;  %v185_v51 = vld [vmem:[%s768_s27 + $0x40] sm:$0xff] }
  0x1c   : > { %270 = vmatprep.subr.mxu0 %v583_v1  ;;  %510 = vmatprep.subr.mxu1 %v583_v1  ;;  %v188_v52 = vld [vmem:[%s768_s27 + $0x58] sm:$0xff]  ;;  %v205_v53 = vld [vmem:[%s768_s27 + $0xe0] sm:$0xff]  ;;  %v187_v55 = vld [vmem:[%s768_s27 + $0x50] sm:$0xff] }
  0x1d   : > { %271 = vmatpush1.msra.mxu0 %v222_v9  ;;  %542 = vmatpush1.msra.mxu1 %v222_v9  ;;  %v208_v54 = vld [vmem:[%s768_s27 + $0xf8] sm:$0xff]  ;;  %v190_v56 = vld [vmem:[%s768_s27 + $0x68] sm:$0xff]  ;;  %v207_v57 = vld [vmem:[%s768_s27 + $0xf0] sm:$0xff] }
  0x1e   : > { %272 = vmatprep.subr.mxu0 %v583_v1  ;;  %511 = vmatprep.subr.mxu1 %v583_v1  ;;  %v210_v58 = vld [vmem:[%s768_s27 + $0x108] sm:$0xff]  ;;  %v189_v59 = vld [vmem:[%s768_s27 + $0x60] sm:$0xff]  ;;  %v192_v60 = vld [vmem:[%s768_s27 + $0x78] sm:$0xff] }
  0x1f   : > { %273 = vmatpush1.msra.mxu0 %v221_v10  ;;  %543 = vmatpush1.msra.mxu1 %v221_v10  ;;  %v209_v61 = vld [vmem:[%s768_s27 + $0x100] sm:$0xff]  ;;  %v212_v62 = vld [vmem:[%s768_s27 + $0x118] sm:$0xff]  ;;  %v191_v63 = vld [vmem:[%s768_s27 + $0x70] sm:$0xff] }
  0x20   : > { %274 = vmatprep.subr.mxu0 %v583_v1  ;;  %512 = vmatprep.subr.mxu1 %v583_v1  ;;  %v194_v0 = vld [vmem:[%s768_s27 + $0x88] sm:$0xff]  ;;  %v193_v3 = vld [vmem:[%s768_s27 + $0x80] sm:$0xff]  ;;  %v196_v4 = vld [vmem:[%s768_s27 + $0x98] sm:$0xff] }
  0x21   : > { %275 = vmatpush1.msra.mxu0 %v220_v11  ;;  %544 = vmatpush1.msra.mxu1 %v220_v11  ;;  %v214_v2 = vld [vmem:[%s768_s27 + $0x128] sm:$0xff]  ;;  %v213_v5 = vld [vmem:[%s768_s27 + $0x120] sm:$0xff]  ;;  %v195_v6 = vld [vmem:[%s768_s27 + $0x90] sm:$0xff] }
  0x22   : > { %276 = vmatprep.subr.mxu0 %v583_v1  ;;  %513 = vmatprep.subr.mxu1 %v583_v1  ;;  %v824_v7 = vld [vmem:[%s893_s2] ss:$0 sm:$0xff] }
  0x23   : > { %277 = vmatpush1.msra.mxu0 %v219_v12  ;;  %545 = vmatpush1.msra.mxu1 %v219_v12 }
  0x24   : > { %278 = vmatprep.subr.mxu0 %v583_v1  ;;  %514 = vmatprep.subr.mxu1 %v583_v1 }
  0x25   : > { %279 = vmatpush1.msra.mxu0 %v218_v13  ;;  %546 = vmatpush1.msra.mxu1 %v218_v13 }
  0x26   : > { %280 = vmatprep.subr.mxu0 %v583_v1  ;;  %515 = vmatprep.subr.mxu1 %v583_v1 }
  0x27   : > { %281 = vmatpush1.msra.mxu0 %v217_v14  ;;  %547 = vmatpush1.msra.mxu1 %v217_v14 }
  0x28   : > { %282 = vmatprep.subr.mxu0 %v583_v1  ;;  %516 = vmatprep.subr.mxu1 %v583_v1 }
  0x29   : > { %283 = vmatpush1.msra.mxu0 %v216_v15  ;;  %548 = vmatpush1.msra.mxu1 %v216_v15 }
  0x2a   : > { %284 = vmatprep.subr.mxu0 %v583_v1  ;;  %517 = vmatprep.subr.mxu1 %v583_v1 }
  0x2b   : > { %285 = vmatpush1.msra.mxu0 %v215_v16  ;;  %549 = vmatpush1.msra.mxu1 %v215_v16 }
  0x2c   : > { %286 = vmatprep.subr.mxu0 %v583_v1  ;;  %518 = vmatprep.subr.mxu1 %v583_v1 }
  0x2d   : > { %287 = vmatpush2.msra.mxu0 %v246_v17  ;;  %550 = vmatpush2.msra.mxu1 %v246_v17 }
  0x2e   : > { %288 = vmatprep.subr.mxu0 %v583_v1  ;;  %519 = vmatprep.subr.mxu1 %v583_v1 }
  0x2f   : > { %289 = vmatpush2.msra.mxu0 %v245_v18  ;;  %551 = vmatpush2.msra.mxu1 %v245_v18 }
  0x30   : > { %290 = vmatprep.subr.mxu0 %v583_v1  ;;  %520 = vmatprep.subr.mxu1 %v583_v1 }
  0x31   : > { %291 = vmatpush2.msra.mxu0 %v244_v19  ;;  %552 = vmatpush2.msra.mxu1 %v244_v19 }
  0x32   : > { %292 = vmatprep.subr.mxu0 %v583_v1  ;;  %521 = vmatprep.subr.mxu1 %v583_v1 }
  0x33   : > { %293 = vmatpush2.msra.mxu0 %v243_v20  ;;  %553 = vmatpush2.msra.mxu1 %v243_v20 }
  0x34   : > { %294 = vmatprep.subr.mxu0 %v583_v1  ;;  %522 = vmatprep.subr.mxu1 %v583_v1 }
  0x35   : > { %295 = vmatpush2.msra.mxu0 %v242_v21  ;;  %554 = vmatpush2.msra.mxu1 %v242_v21 }
  0x36   : > { %296 = vmatprep.subr.mxu0 %v583_v1  ;;  %523 = vmatprep.subr.mxu1 %v583_v1 }
  0x37   : > { %297 = vmatpush2.msra.mxu0 %v241_v22  ;;  %555 = vmatpush2.msra.mxu1 %v241_v22 }
  0x38   : > { %298 = vmatprep.subr.mxu0 %v583_v1  ;;  %524 = vmatprep.subr.mxu1 %v583_v1 }
  0x39   : > { %299 = vmatpush2.msra.mxu0 %v240_v23  ;;  %556 = vmatpush2.msra.mxu1 %v240_v23 }
  0x3a   : > { %300 = vmatprep.subr.mxu0 %v583_v1  ;;  %525 = vmatprep.subr.mxu1 %v583_v1 }
  0x3b   : > { %301 = vmatpush2.msra.mxu0 %v239_v24  ;;  %557 = vmatpush2.msra.mxu1 %v239_v24 }
  0x3c   : > { %302 = vmatprep.subr.mxu0 %v583_v1  ;;  %526 = vmatprep.subr.mxu1 %v583_v1 }
  0x3d   : > { %303 = vmatpush2.msra.mxu0 %v238_v25  ;;  %558 = vmatpush2.msra.mxu1 %v238_v25 }
  0x3e   : > { %304 = vmatprep.subr.mxu0 %v583_v1  ;;  %527 = vmatprep.subr.mxu1 %v583_v1 }
  0x3f   : > { %305 = vmatpush2.msra.mxu0 %v237_v26  ;;  %559 = vmatpush2.msra.mxu1 %v237_v26 }
  0x40   : > { %306 = vmatprep.subr.mxu0 %v583_v1  ;;  %528 = vmatprep.subr.mxu1 %v583_v1 }
  0x41   : > { %307 = vmatpush2.msra.mxu0 %v236_v27  ;;  %560 = vmatpush2.msra.mxu1 %v236_v27 }
  0x42   : > { %308 = vmatprep.subr.mxu0 %v583_v1  ;;  %529 = vmatprep.subr.mxu1 %v583_v1 }
  0x43   : > { %309 = vmatpush2.msra.mxu0 %v235_v28  ;;  %561 = vmatpush2.msra.mxu1 %v235_v28 }
  0x44   : > { %310 = vmatprep.subr.mxu0 %v583_v1  ;;  %530 = vmatprep.subr.mxu1 %v583_v1 }
  0x45   : > { %311 = vmatpush2.msra.mxu0 %v234_v29  ;;  %562 = vmatpush2.msra.mxu1 %v234_v29 }
  0x46   : > { %312 = vmatprep.subr.mxu0 %v583_v1  ;;  %531 = vmatprep.subr.mxu1 %v583_v1 }
  0x47   : > { %313 = vmatpush2.msra.mxu0 %v233_v30  ;;  %563 = vmatpush2.msra.mxu1 %v233_v30 }
  0x48   : > { %314 = vmatprep.subr.mxu0 %v583_v1  ;;  %532 = vmatprep.subr.mxu1 %v583_v1 }
  0x49   : > { %315 = vmatpush2.msra.mxu0 %v232_v31  ;;  %564 = vmatpush2.msra.mxu1 %v232_v31 }
  0x4a   : > { %316 = vmatprep.subr.mxu0 %v583_v1  ;;  %318 = vmatprep.mubr.f32.mxu0 %v178_v32 }
  0x4b   : > { %317 = vmatpush2.msra.mxu0 %v231_v33  ;;  %533 = vmatprep.subr.mxu1 %v583_v1  ;;  %v211_v1 = vld [vmem:[%s768_s27 + $0x110] sm:$0xff] }
  0x4c   : > { %319 = vmatmul.mubr.f32.vlgmr.msra.gmra.mxu0 %v177_v34  ;;  %565 = vmatpush2.msra.mxu1 %v231_v33 }
  0x4d   : > { %368 = vmatprep.mubr.f32.mxu1 %v198_v35  ;;  %323 = vmatprep.mubr.f32.mxu0 %v180_v36 }
  0x4e   : > { %369 = vmatmul.mubr.f32.vlgmr.msra.gmra.mxu1 %v197_v37 }
  0x4f   : > { %373 = vmatprep.mubr.f32.mxu1 %v200_v38 }
  0x50   : > { %324 = vmatmul.mubr.f32.gmra.mxu0 %v179_v39 }
  0x51   : > { %328 = vmatprep.mubr.f32.mxu0 %v182_v40 }
  0x52   : > { %374 = vmatmul.mubr.f32.gmra.mxu1 %v199_v41 }
  0x53   : > { %378 = vmatprep.mubr.f32.mxu1 %v202_v42 }
  0x54   : > { %329 = vmatmul.mubr.f32.gmra.mxu0 %v181_v43 }
  0x55   : > { %333 = vmatprep.mubr.f32.mxu0 %v184_v44 }
  0x56   : > { %379 = vmatmul.mubr.f32.gmra.mxu1 %v201_v45 }
  0x57   : > { %383 = vmatprep.mubr.f32.mxu1 %v204_v46 }
  0x58   : > { %334 = vmatmul.mubr.f32.gmra.mxu0 %v183_v47 }
  0x59   : > { %338 = vmatprep.mubr.f32.mxu0 %v186_v48 }
  0x5a   : > { %384 = vmatmul.mubr.f32.gmra.mxu1 %v203_v49 }
  0x5b   : > { %388 = vmatprep.mubr.f32.mxu1 %v206_v50 }
  0x5c   : > { %339 = vmatmul.mubr.f32.gmra.mxu0 %v185_v51 }
  0x5d   : > { %343 = vmatprep.mubr.f32.mxu0 %v188_v52 }
  0x5e   : > { %389 = vmatmul.mubr.f32.gmra.mxu1 %v205_v53 }
  0x5f   : > { %393 = vmatprep.mubr.f32.mxu1 %v208_v54 }
  0x60   : > { %344 = vmatmul.mubr.f32.gmra.mxu0 %v187_v55 }
  0x61   : > { %348 = vmatprep.mubr.f32.mxu0 %v190_v56 }
  0x62   : > { %394 = vmatmul.mubr.f32.gmra.mxu1 %v207_v57 }
  0x63   : > { %398 = vmatprep.mubr.f32.mxu1 %v210_v58 }
  0x64   : > { %349 = vmatmul.mubr.f32.gmra.mxu0 %v189_v59 }
  0x65   : > { %353 = vmatprep.mubr.f32.mxu0 %v192_v60 }
  0x66   : > { %399 = vmatmul.mubr.f32.gmra.mxu1 %v209_v61 }
  0x67   : > { %403 = vmatprep.mubr.f32.mxu1 %v212_v62 }
  0x68   : > { %354 = vmatmul.mubr.f32.gmra.mxu0 %v191_v63 }
  0x69   : > { %358 = vmatprep.mubr.f32.mxu0 %v194_v0 }
  0x6a   : > { %404 = vmatmul.mubr.f32.gmra.mxu1 %v211_v1 }
  0x6b   : > { %408 = vmatprep.mubr.f32.mxu1 %v214_v2 }
  0x6c   : > { %359 = vmatmul.mubr.f32.gmra.mxu0 %v193_v3 }
  0x6d   : > { %363 = vmatprep.mubr.f32.mxu0 %v196_v4 }
  0x6e   : > { %409 = vmatmul.mubr.f32.gmra.mxu1 %v213_v5 }
  0x70   : > { %364 = vmatmul.mubr.f32.gmra.mxu0 %v195_v6 }
 0x10c   : > { %v320_v8 = vpop.f32.mrf.mxu0 }
 0x10d   : > { %v321_v9 = vadd.f32 %v824_v7, %v320_v8 }
 0x10e   : > { %v322_v10 = vpop.f32.mrf.mxu0  ;;  %v370_v11 = vpop.f32.mrf.mxu1 }
 0x10f   : > { %415 = vst.msk [vmem:[%s829_s13] sm:$0xff] %vm414_vm0, %v321_v9  ;;  %v371_v12 = vadd.f32 %v824_v7, %v370_v11 }
 0x110   : > { %v325_v13 = vpop.f32.mrf.mxu0  ;;  %v372_v14 = vpop.f32.mrf.mxu1 }
 0x111   : > { %425 = vst.msk [vmem:[%s829_s13 + $0x50] sm:$0xff] %vm414_vm0, %v371_v12  ;;  %v326_v15 = vadd.f32 %v824_v7, %v325_v13 }
 0x112   : > { %v327_v16 = vpop.f32.mrf.mxu0  ;;  %v375_v17 = vpop.f32.mrf.mxu1 }
 0x113   : > { %416 = vst.msk [vmem:[%s829_s13 + $0x8] sm:$0xff] %vm414_vm0, %v326_v15  ;;  %v376_v18 = vadd.f32 %v824_v7, %v375_v17 }
 0x114   : > { %v330_v19 = vpop.f32.mrf.mxu0  ;;  %v377_v20 = vpop.f32.mrf.mxu1 }
 0x115   : > { %426 = vst.msk [vmem:[%s829_s13 + $0x58] sm:$0xff] %vm414_vm0, %v376_v18  ;;  %v331_v21 = vadd.f32 %v824_v7, %v330_v19 }
 0x116   : > { %v332_v22 = vpop.f32.mrf.mxu0  ;;  %v380_v23 = vpop.f32.mrf.mxu1 }
 0x117   : > { %417 = vst.msk [vmem:[%s829_s13 + $0x10] sm:$0xff] %vm414_vm0, %v331_v21  ;;  %v381_v24 = vadd.f32 %v824_v7, %v380_v23 }
 0x118   : > { %v335_v25 = vpop.f32.mrf.mxu0  ;;  %v382_v26 = vpop.f32.mrf.mxu1 }
 0x119   : > { %427 = vst.msk [vmem:[%s829_s13 + $0x60] sm:$0xff] %vm414_vm0, %v381_v24  ;;  %v336_v27 = vadd.f32 %v824_v7, %v335_v25 }
 0x11a   : > { %v337_v28 = vpop.f32.mrf.mxu0  ;;  %v385_v29 = vpop.f32.mrf.mxu1 }
 0x11b   : > { %418 = vst.msk [vmem:[%s829_s13 + $0x18] sm:$0xff] %vm414_vm0, %v336_v27  ;;  %v386_v30 = vadd.f32 %v824_v7, %v385_v29 }
 0x11c   : > { %v340_v31 = vpop.f32.mrf.mxu0  ;;  %v387_v32 = vpop.f32.mrf.mxu1 }
 0x11d   : > { %428 = vst.msk [vmem:[%s829_s13 + $0x68] sm:$0xff] %vm414_vm0, %v386_v30  ;;  %v341_v33 = vadd.f32 %v824_v7, %v340_v31 }
 0x11e   : > { %v342_v34 = vpop.f32.mrf.mxu0  ;;  %v390_v35 = vpop.f32.mrf.mxu1 }
 0x11f   : > { %419 = vst.msk [vmem:[%s829_s13 + $0x20] sm:$0xff] %vm414_vm0, %v341_v33  ;;  %v391_v36 = vadd.f32 %v824_v7, %v390_v35 }
 0x120   : > { %v345_v37 = vpop.f32.mrf.mxu0  ;;  %v392_v38 = vpop.f32.mrf.mxu1 }
 0x121   : > { %429 = vst.msk [vmem:[%s829_s13 + $0x70] sm:$0xff] %vm414_vm0, %v391_v36  ;;  %v346_v39 = vadd.f32 %v824_v7, %v345_v37 }
 0x122   : > { %v347_v40 = vpop.f32.mrf.mxu0  ;;  %v395_v41 = vpop.f32.mrf.mxu1 }
 0x123   : > { %420 = vst.msk [vmem:[%s829_s13 + $0x28] sm:$0xff] %vm414_vm0, %v346_v39  ;;  %v396_v42 = vadd.f32 %v824_v7, %v395_v41 }
 0x124   : > { %v350_v43 = vpop.f32.mrf.mxu0  ;;  %v397_v44 = vpop.f32.mrf.mxu1 }
 0x125   : > { %430 = vst.msk [vmem:[%s829_s13 + $0x78] sm:$0xff] %vm414_vm0, %v396_v42  ;;  %v351_v45 = vadd.f32 %v824_v7, %v350_v43 }
 0x126   : > { %v352_v46 = vpop.f32.mrf.mxu0  ;;  %v400_v47 = vpop.f32.mrf.mxu1 }
 0x127   : > { %421 = vst.msk [vmem:[%s829_s13 + $0x30] sm:$0xff] %vm414_vm0, %v351_v45  ;;  %v401_v48 = vadd.f32 %v824_v7, %v400_v47 }
 0x128   : > { %v355_v49 = vpop.f32.mrf.mxu0  ;;  %v402_v50 = vpop.f32.mrf.mxu1 }
 0x129   : > { %431 = vst.msk [vmem:[%s829_s13 + $0x80] sm:$0xff] %vm414_vm0, %v401_v48  ;;  %v356_v51 = vadd.f32 %v824_v7, %v355_v49 }
 0x12a   : > { %v357_v52 = vpop.f32.mrf.mxu0  ;;  %v405_v53 = vpop.f32.mrf.mxu1 }
 0x12b   : > { %422 = vst.msk [vmem:[%s829_s13 + $0x38] sm:$0xff] %vm414_vm0, %v356_v51  ;;  %v406_v54 = vadd.f32 %v824_v7, %v405_v53 }
 0x12c   : > { %v360_v55 = vpop.f32.mrf.mxu0  ;;  %v407_v56 = vpop.f32.mrf.mxu1 }
 0x12d   : > { %432 = vst.msk [vmem:[%s829_s13 + $0x88] sm:$0xff] %vm414_vm0, %v406_v54  ;;  %v361_v57 = vadd.f32 %v824_v7, %v360_v55 }
 0x12e   : > { %v362_v58 = vpop.f32.mrf.mxu0  ;;  %v410_v59 = vpop.f32.mrf.mxu1 }
 0x12f   : > { %423 = vst.msk [vmem:[%s829_s13 + $0x40] sm:$0xff] %vm414_vm0, %v361_v57  ;;  %v411_v60 = vadd.f32 %v824_v7, %v410_v59 }
 0x130   : > { %v365_v61 = vpop.f32.mrf.mxu0  ;;  %v412_v62 = vpop.f32.mrf.mxu1 }
 0x131   : > { %433 = vst.msk [vmem:[%s829_s13 + $0x90] sm:$0xff] %vm414_vm0, %v411_v60  ;;  %v366_v63 = vadd.f32 %v824_v7, %v365_v61 }
 0x132   : > { %v367_v0 = vpop.f32.mrf.mxu0 }
 0x133   : > { %424 = vst.msk [vmem:[%s829_s13 + $0x48] sm:$0xff] %vm414_vm0, %v366_v63 }
 0x134 PF: > { %s13_s12 = sadd.s32 1, %s581_s12  }
 0x135   : > { %p10_p4 = scmp.ge.s32.totalorder %s13_s12, 4  }
 0x137   :  { %12 = sbr.rel (!%p10_p4) target bundleno = 1 (0x1), region = 62 }

</bundles_post_ra>
